<compile_context>
chip_gen: v6e
topology: v6e:2x2x1
jax: 0.10.0
libtpu: 0.0.40
codegen_flags: <defaults>
</compile_context>

<pallas_src>
import functools

import jax
import jax.numpy as jnp
from jax.experimental import pallas as pl
from jax.experimental.pallas import tpu as pltpu


def _label_smoothing_kernel(pred_ref, tgt_ref, loss_ref, *, smoothing):
    """Per-row smoothed cross-entropy for one batch tile.

    pred_ref: (bn, C)  logits (any float dtype; upcast to f32 in-kernel)
    tgt_ref : (bn, 1)  int32 class indices
    loss_ref: (bn, 1)  f32 per-row losses
    """
    pred = pred_ref[...].astype(jnp.float32)
    tgt = tgt_ref[...]

    bn, n_cls = pred.shape
    confidence = 1.0 - smoothing
    off_value = smoothing / (n_cls - 1)

    # Row-wise statistics (single pass over the (bn, C) tile).
    m = jnp.max(pred, axis=-1, keepdims=True)                          # (bn, 1)
    lse = jnp.log(jnp.sum(jnp.exp(pred - m), axis=-1, keepdims=True))  # (bn, 1)
    sum_pred = jnp.sum(pred, axis=-1, keepdims=True)                   # (bn, 1)

    # pred[row, target[row]] via a masked lane-reduce (one-hot compare).
    col = jax.lax.broadcasted_iota(jnp.int32, (bn, n_cls), 1)
    pred_tgt = jnp.sum(jnp.where(col == tgt, pred, 0.0), axis=-1, keepdims=True)

    # Closed form of sum_c(-true_dist * log_softmax(pred))_row, using
    # confidence + (C-1)*off_value == 1:
    loss_ref[...] = (
        (m + lse)
        - (confidence - off_value) * pred_tgt
        - off_value * sum_pred
    )


def label_smoothing_loss(pred, target, *, smoothing=0.1, block_n=None,
                         vmem_budget_bytes=12 * 1024 * 1024):
    """pred: (N, C) float logits; target: (N,) int class indices. Returns scalar."""
    n, c = pred.shape
    tgt2d = target.astype(jnp.int32).reshape(n, 1)

    if block_n is None:
        # Largest batch tile such that the double-buffered pred tile fits the
        # VMEM budget (conservative for v5e's 16 MiB default scoped VMEM and
        # v7x's 64 MiB physical VMEM); cap at 1024 rows.
        bytes_per_row = c * jnp.dtype(pred.dtype).itemsize
        block_n = vmem_budget_bytes // (2 * bytes_per_row)
        block_n = max(8, min(1024, (block_n // 8) * 8))
    if n <= block_n:
        block_n = n  # single full-batch block (full-dim block is always legal)

    kernel = functools.partial(_label_smoothing_kernel, smoothing=float(smoothing))

    per_row = pl.pallas_call(
        kernel,
        out_shape=jax.ShapeDtypeStruct((n, 1), jnp.float32),
        grid_spec=pltpu.PrefetchScalarGridSpec(
            num_scalar_prefetch=0,
            grid=(pl.cdiv(n, block_n),),
            in_specs=[
                pl.BlockSpec((block_n, c), lambda i: (i, 0)),
                pl.BlockSpec((block_n, 1), lambda i: (i, 0)),
            ],
            out_specs=pl.BlockSpec((block_n, 1), lambda i: (i, 0)),
        ),
        compiler_params=pltpu.CompilerParams(
            dimension_semantics=("parallel",),  # no carried state -> megacore-safe
        ),
    )(pred, tgt2d)

    # Final reduction + mean done once in XLA (cheap: N floats).
    return jnp.mean(per_row)


def _reference(pred, target, smoothing):
    # Pure-JAX reference reproducing the PyTorch module's forward.
    n, c = pred.shape
    logp = jax.nn.log_softmax(pred.astype(jnp.float32), axis=-1)
    true_dist = jnp.full((n, c), smoothing / (c - 1), dtype=jnp.float32)
    true_dist = true_dist.at[jnp.arange(n), target].set(1.0 - smoothing)
    return jnp.mean(jnp.sum(-true_dist * logp, axis=-1))


if __name__ == "__main__":
    key = jax.random.PRNGKey(0)
    k1, k2 = jax.random.split(key)

    N, C = 16, 128          # small synthetic shapes: batch=16, classes=128
    smoothing = 0.1

    pred = jax.random.normal(k1, (N, C), dtype=jnp.float32)
    target = jax.random.randint(k2, (N,), 0, C, dtype=jnp.int32)

    loss = label_smoothing_loss(pred, target, smoothing=smoothing)
    loss = jax.block_until_ready(loss)

    ref = _reference(pred, target, smoothing)
    assert jnp.allclose(loss, ref, rtol=1e-4, atol=1e-5), (loss, ref)

    print("KERNEL_OK")
</pallas_src>

<mosaic_0001>
module attributes {stable_mosaic.version = 11 : i64} {
  func.func @_label_smoothing_kernel(%arg0: i32, %arg1: memref<16x128xf32, #tpu.memory_space<vmem>>, %arg2: memref<16x1xi32, #tpu.memory_space<vmem>>, %arg3: memref<16x1xf32, #tpu.memory_space<vmem>>) attributes {dimension_semantics = [#tpu.dimension_semantics<parallel>], iteration_bounds = array<i64: 1>, scalar_prefetch = 0 : i64, scratch_operands = 0 : i64, tpu.core_type = #tpu.core_type<tc>, window_params = [{transform_indices = @transform_0, window_bounds = array<i64: 16, 128>}, {transform_indices = @transform_1, window_bounds = array<i64: 16, 1>}, {transform_indices = @transform_2, window_bounds = array<i64: 16, 1>}]} {
    %c0 = arith.constant 0 : index
    %c0_0 = arith.constant 0 : index
    %0 = vector.load %arg1[%c0, %c0_0] : memref<16x128xf32, #tpu.memory_space<vmem>>, vector<16x128xf32>
    %c0_1 = arith.constant 0 : index
    %c0_2 = arith.constant 0 : index
    %1 = vector.load %arg2[%c0_1, %c0_2] : memref<16x1xi32, #tpu.memory_space<vmem>>, vector<16x1xi32>
    %cst = arith.constant dense<0xFF800000> : vector<16xf32>
    %2 = vector.multi_reduction <maximumf>, %0, %cst [1] : vector<16x128xf32> to vector<16xf32>
    %3 = vector.shape_cast %2 : vector<16xf32> to vector<16x1xf32>
    %4 = vector.broadcast %3 : vector<16x1xf32> to vector<16x128xf32>
    %5 = arith.subf %0, %4 : vector<16x128xf32>
    %6 = math.exp %5 : vector<16x128xf32>
    %cst_3 = arith.constant dense<0.000000e+00> : vector<16xf32>
    %7 = vector.multi_reduction <add>, %6, %cst_3 [1] : vector<16x128xf32> to vector<16xf32>
    %8 = vector.shape_cast %7 : vector<16xf32> to vector<16x1xf32>
    %9 = math.log %8 : vector<16x1xf32>
    %cst_4 = arith.constant dense<0.000000e+00> : vector<16xf32>
    %10 = vector.multi_reduction <add>, %0, %cst_4 [1] : vector<16x128xf32> to vector<16xf32>
    %11 = vector.shape_cast %10 : vector<16xf32> to vector<16x1xf32>
    %12 = tpu.iota {dimensions = array<i32: 1>} : vector<16x128xi32>
    %13 = vector.broadcast %1 : vector<16x1xi32> to vector<16x128xi32>
    %14 = arith.cmpi eq, %12, %13 : vector<16x128xi32>
    %cst_5 = arith.constant 0.000000e+00 : f32
    %15 = vector.broadcast %cst_5 : f32 to vector<16x128xf32>
    %16 = arith.select %14, %0, %15 : vector<16x128xi1>, vector<16x128xf32>
    %cst_6 = arith.constant dense<0.000000e+00> : vector<16xf32>
    %17 = vector.multi_reduction <add>, %16, %cst_6 [1] : vector<16x128xf32> to vector<16xf32>
    %18 = vector.shape_cast %17 : vector<16xf32> to vector<16x1xf32>
    %19 = arith.addf %3, %9 : vector<16x1xf32>
    %cst_7 = arith.constant 0.899212599 : f32
    %20 = vector.broadcast %cst_7 : f32 to vector<16x1xf32>
    %21 = arith.mulf %20, %18 : vector<16x1xf32>
    %22 = arith.subf %19, %21 : vector<16x1xf32>
    %cst_8 = arith.constant 7.87401571E-4 : f32
    %23 = vector.broadcast %cst_8 : f32 to vector<16x1xf32>
    %24 = arith.mulf %23, %11 : vector<16x1xf32>
    %25 = arith.subf %22, %24 : vector<16x1xf32>
    %c0_9 = arith.constant 0 : index
    %c0_10 = arith.constant 0 : index
    %26 = vector.load %arg3[%c0_9, %c0_10] : memref<16x1xf32, #tpu.memory_space<vmem>>, vector<16x1xf32>
    tpu.vector_store %arg3[%c0_9, %c0_10], %25 {strides = array<i32>} : memref<16x1xf32, #tpu.memory_space<vmem>>, vector<16x1xf32>,
    return
  }
  func.func @transform_0(%arg0: i32) -> (i32, i32) {
    %c0_i32 = arith.constant 0 : i32
    %c0_i32_0 = arith.constant 0 : i32
    return %arg0, %c0_i32 : i32, i32
  }
  func.func @transform_1(%arg0: i32) -> (i32, i32) {
    %c0_i32 = arith.constant 0 : i32
    %c0_i32_0 = arith.constant 0 : i32
    return %arg0, %c0_i32 : i32, i32
  }
  func.func @transform_2(%arg0: i32) -> (i32, i32) {
    %c0_i32 = arith.constant 0 : i32
    %c0_i32_0 = arith.constant 0 : i32
    return %arg0, %c0_i32 : i32, i32
  }
}

</mosaic_0001>

<bundles_post_ra>
// kernel: tpu_custom_call.1
= control target key start
LH: loop header
LB: loop body
LE: loop exit
PB: predicated region body
PF: predicated region fallthrough
CT: control target
= control target key end

     0   :  { %v81_v1 = vmov 0   ;;  %v37_v11 = vlaneseq  ;;  %vm63_vm2 = vcmask 7168   ;;  %s115_s0 = inlined_call_operand.vmem [shape: f32[16,128], index: 0, kind: input, shape index: {}]   ;;  %s116_s1 = inlined_call_operand.vmem [shape: s32[16,1], index: 1, kind: input, shape index: {}]   ;;  %s117_s2 = inlined_call_operand.vmem [shape: f32[16,1], index: 2, kind: output, shape index: {}]  }
   0x1   :  { %v11_v0 = vld [vmem:[%s115_s0] sm:$0xff]  ;;  %71 = vset.pattern.permute.xlu1 %v81_v1  ;;  %72 = vset.pattern.permute.xlu0 %v81_v1  ;;  %v12_v3 = vld [vmem:[%s115_s0 + $0x8] sm:$0xff] }
   0x2   :  { %v13_v2 = vld [vmem:[%s116_s1] sm:$0xff]  ;;  %15 = vmax.xlane.f32.xlu0 %v11_v0  ;;  %v14_v4 = vld [vmem:[%s116_s1 + $0x8] sm:$0xff]  ;;  %v38_v13 = vand.u32 127, %v37_v11 }
   0x3   :  { %40 = vperm.xlu1 %71, %v13_v2  }
   0x6   :  { %17 = vmax.xlane.f32.xlu0 %v12_v3 }
   0x7   :  { %43 = vperm.xlu1 %71, %v14_v4  }
  0x7e   :  { %v41_v12 = vpop.permute.xlu1 %40 }
  0x7f   :  { %vm45_vm0 = vcmp.eq.s32.totalorder %v38_v13, %v41_v12 }
  0x80   :  { %v47_v16 = vsel %vm45_vm0, %v11_v0, 0.0 }
  0x82   :  { %v44_v15 = vpop.permute.xlu1 %43 }
  0x83   :  { %vm46_vm1 = vcmp.eq.s32.totalorder %v38_v13, %v44_v15 }
  0x84   :  { %v48_v18 = vsel %vm46_vm1, %v12_v3, 0.0 }
  0x8b   :  { %v16_v5 = vpop.xlane.xlu0 %15 }
  0x8c   :  { %v19_v6 = vsub.f32 %v11_v0, %v16_v5 }
  0x8e   :  { %v21_v7 = vmul.f32 1.442695, %v19_v6 }
  0x8f   :  { %v18_v8 = vpop.xlane.xlu0 %17 }
  0x90   :  { %73 = vpow2.f32 %v21_v7  ;;  %v20_v9 = vsub.f32 %v12_v3, %v18_v8 }
  0x92   :  { %v23_v10 = vmul.f32 1.442695, %v20_v9 }
  0x94   :  { %75 = vpow2.f32 %v23_v10 }
  0x9d   :  { %v74_v14 = vpop.eup %73 }
  0x9e   :  { %25 = vadd.xlane.f32.xlu0 %v74_v14 }
  0xa1   :  { %v76_v17 = vpop.eup %75 }
  0xa2   :  { %27 = vadd.xlane.f32.xlu1 %v76_v17  ;;  %49 = vadd.xlane.f32.xlu0 %v47_v16 }
  0xa6   :  { %51 = vadd.xlane.f32.xlu0 %v48_v18 }
  0xaa   :  { %33 = vadd.xlane.f32.xlu0 %v11_v0 }
  0xae   :  { %35 = vadd.xlane.f32.xlu0 %v12_v3 }
 0x127   :  { %v26_v19 = vpop.xlane.xlu0 %25 }
 0x128   :  { %77 = vlog2.f32 %v26_v19 }
 0x12b   :  { %v28_v20 = vpop.xlane.xlu1 %27  ;;  %v50_v21 = vpop.xlane.xlu0 %49 }
 0x12c   :  { %79 = vlog2.f32 %v28_v20  ;;  %v55_v27 = vmul.f32 0.8992126, %v50_v21 }
 0x12f   :  { %v52_v22 = vpop.xlane.xlu0 %51 }
 0x130   :  { %v56_v34 = vmul.f32 0.8992126, %v52_v22 }
 0x133   :  { %v34_v23 = vpop.xlane.xlu0 %33 }
 0x134   :  { %v59_v28 = vmul.f32 0.0007874016, %v34_v23 }
 0x135   :  { %v78_v24 = vpop.eup %77 }
 0x136   :  { %v30_v25 = vmul.f32 0.6931472, %v78_v24 }
 0x137   :  { %v36_v30 = vpop.xlane.xlu0 %35 }
 0x138   :  { %v53_v26 = vadd.f32 %v30_v25, %v16_v5  ;;  %v60_v36 = vmul.f32 0.0007874016, %v36_v30 }
 0x139   :  { %v80_v29 = vpop.eup %79 }
 0x13a   :  { %v32_v31 = vmul.f32 0.6931472, %v80_v29  ;;  %v57_v32 = vsub.f32 %v53_v26, %v55_v27 }
 0x13c   :  { %v54_v33 = vadd.f32 %v32_v31, %v18_v8  ;;  %v61_v35 = vsub.f32 %v57_v32, %v59_v28 }
 0x13e   :  { %v58_v37 = vsub.f32 %v54_v33, %v56_v34  ;;  %64 = vst.msk [vmem:[%s117_s2] sm:$0xff] %vm63_vm2, %v61_v35 }
 0x140   :  { %v62_v38 = vsub.f32 %v58_v37, %v60_v36 }
 0x142   :  { %65 = vst.msk [vmem:[%s117_s2 + $0x8] sm:$0xff] %vm63_vm2, %v62_v38 }

</bundles_post_ra>
